<compile_context>
chip_gen: v7x
topology: tpu7x:2x2x1
jax: 0.10.0
libtpu: 0.0.40
codegen_flags: <defaults>
</compile_context>

<pallas_src>
import functools

import jax
import jax.numpy as jnp
from jax import lax
from jax.experimental import pallas as pl
from jax.experimental.pallas import tpu as pltpu


def _lstm_kernel(xproj_ref, wh_hbm_ref,            # inputs
                 hs_ref, h_last_ref, c_last_ref,   # outputs
                 wh_vmem, wh_sem, h_sc, c_sc,      # scratch
                 *, seq_len, t_chunk, hidden):
    """One grid step == one (batch block, time chunk) of the LSTM recurrence."""
    chunk = pl.program_id(1)
    n_chunks = pl.num_programs(1)

    # Prologue per batch block: fetch the recurrent weight once into a
    # single-buffered VMEM scratch and zero the carried state.  chunk == 0
    # fires once per batch block, so this stays correct when the parallel
    # batch axis is sharded across TensorCores (each core owns its scratch).
    @pl.when(chunk == 0)
    def _():
        cp = pltpu.make_async_copy(wh_hbm_ref, wh_vmem, wh_sem.at[0])
        cp.start()
        cp.wait()
        h_sc[...] = jnp.zeros_like(h_sc)
        c_sc[...] = jnp.zeros_like(c_sc)

    wh = wh_vmem[...]                              # (H, 4H) resident weight

    def step(t_local, carry):
        h_prev, c_prev = carry                     # f32 (B_TILE, H)
        # Single fused-gate matmul per step: (B_TILE, H) @ (H, 4H), f32 acc.
        gates = jnp.dot(h_prev.astype(wh.dtype), wh,
                        preferred_element_type=jnp.float32)
        # x @ Wx + b was precomputed outside the recurrence (Xproj).
        gates = gates + xproj_ref[t_local]          # (B_TILE, 4H) f32
        i_t = jax.nn.sigmoid(gates[:, 0 * hidden:1 * hidden])
        f_t = jax.nn.sigmoid(gates[:, 1 * hidden:2 * hidden])
        g_t = jnp.tanh(gates[:, 2 * hidden:3 * hidden])
        o_t = jax.nn.sigmoid(gates[:, 3 * hidden:4 * hidden])
        c_t = f_t * c_prev + i_t * g_t
        h_t = o_t * jnp.tanh(c_t)
        # Mask padded timesteps (sequence padded up to a multiple of t_chunk):
        # padded steps simply carry the previous state.
        valid = (chunk * t_chunk + t_local) < seq_len
        h_t = jnp.where(valid, h_t, h_prev)
        c_t = jnp.where(valid, c_t, c_prev)
        hs_ref[t_local] = h_t.astype(hs_ref.dtype)
        return (h_t, c_t)

    h, c = lax.fori_loop(0, t_chunk, step, (h_sc[...], c_sc[...]), unroll=True)
    h_sc[...] = h
    c_sc[...] = c

    # Final (h, c) written once, on the last time chunk of this batch block.
    @pl.when(chunk == n_chunks - 1)
    def _():
        h_last_ref[...] = h.astype(h_last_ref.dtype)
        c_last_ref[...] = c.astype(c_last_ref.dtype)


def lstm_layer_pallas(x, wx, wh, b, *, t_chunk=None, batch_tile=None,
                      matmul_dtype=jnp.bfloat16):
    """x: (batch, seq, input_size) f32.
    wx: (4, In, H), wh: (4, H, H), b: (4, H) -- gate order (i, f, g, o),
    b is the combined (Linear_x bias + Linear_h bias).

    Returns (hidden_states (B,S,H), (h_last (B,H), c_last (B,H))), matching
    the PyTorch LSTMLayer.forward with the default zero initial state.
    """
    B, S, In = x.shape
    H = wx.shape[-1]

    if t_chunk is None:
        t_chunk = min(S, 16)
    if batch_tile is None:
        batch_tile = B   # one batch block; set < B (multiple of 8) for v7x megacore
    assert B % batch_tile == 0
    assert batch_tile == B or batch_tile % 8 == 0  # (8,128) sublane rule

    # ---- Fuse per-gate weights: Wx -> (In, 4H), Wh -> (H, 4H), b -> (4H,) ----
    wx_f = jnp.transpose(wx, (1, 0, 2)).reshape(In, 4 * H)
    wh_f = jnp.transpose(wh, (1, 0, 2)).reshape(H, 4 * H)
    b_f = b.reshape(4 * H)

    # ---- Hoist the time-independent input projection out of the recurrence:
    # one big (S*B, In) @ (In, 4H) matmul with the bias folded in. ----
    x_sbi = jnp.transpose(x, (1, 0, 2))                          # (S, B, In)
    xproj = jnp.dot(x_sbi.reshape(S * B, In).astype(matmul_dtype),
                    wx_f.astype(matmul_dtype),
                    preferred_element_type=jnp.float32) + b_f[None, :]
    xproj = xproj.reshape(S, B, 4 * H)                           # f32

    # Pad time to a multiple of t_chunk (padded steps are masked in-kernel).
    n_chunks = pl.cdiv(S, t_chunk)
    s_pad = n_chunks * t_chunk
    if s_pad != S:
        xproj = jnp.pad(xproj, ((0, s_pad - S), (0, 0), (0, 0)))

    n_bblk = B // batch_tile
    wh_in = wh_f.astype(matmul_dtype)

    kernel = functools.partial(_lstm_kernel, seq_len=S, t_chunk=t_chunk,
                               hidden=H)

    grid_spec = pltpu.PrefetchScalarGridSpec(
        num_scalar_prefetch=0,
        grid=(n_bblk, n_chunks),
        in_specs=[
            # Pre-projected inputs: one (time-chunk, batch-block) slab per step.
            pl.BlockSpec((t_chunk, batch_tile, 4 * H), lambda bi, c: (c, bi, 0)),
            # Recurrent weight stays in HBM; DMA'd once into VMEM scratch.
            pl.BlockSpec(memory_space=pl.ANY),
        ],
        out_specs=[
            pl.BlockSpec((t_chunk, batch_tile, H), lambda bi, c: (c, bi, 0)),
            pl.BlockSpec((batch_tile, H), lambda bi, c: (bi, 0)),   # h_last
            pl.BlockSpec((batch_tile, H), lambda bi, c: (bi, 0)),   # c_last
        ],
        scratch_shapes=[
            pltpu.VMEM((H, 4 * H), matmul_dtype),      # Wh, single-buffered
            pltpu.SemaphoreType.DMA((1,)),             # its DMA semaphore
            pltpu.VMEM((batch_tile, H), jnp.float32),  # h_{t-1}
            pltpu.VMEM((batch_tile, H), jnp.float32),  # c_{t-1}
        ],
    )

    hs_pad, h_last, c_last = pl.pallas_call(
        kernel,
        out_shape=(
            jax.ShapeDtypeStruct((s_pad, B, H), jnp.float32),
            jax.ShapeDtypeStruct((B, H), jnp.float32),
            jax.ShapeDtypeStruct((B, H), jnp.float32),
        ),
        grid_spec=grid_spec,
        compiler_params=pltpu.CompilerParams(
            # Batch blocks are independent (megacore on v7x); the time
            # recurrence must stay sequential.
            dimension_semantics=("parallel", "arbitrary")),
    )(xproj, wh_in)

    hidden_states = jnp.transpose(hs_pad[:S], (1, 0, 2))   # (B, S, H)
    return hidden_states, (h_last, c_last)


def _ref_lstm(x, wx, wh, b):
    """Pure-JAX f32 reference (mirrors the PyTorch loop)."""
    B, S, In = x.shape
    H = wx.shape[-1]
    h = jnp.zeros((B, H), jnp.float32)
    c = jnp.zeros((B, H), jnp.float32)

    def step(carry, x_t):
        h, c = carry
        def gate(k):
            return x_t @ wx[k] + h @ wh[k] + b[k][None, :]
        i_t = jax.nn.sigmoid(gate(0))
        f_t = jax.nn.sigmoid(gate(1))
        g_t = jnp.tanh(gate(2))
        o_t = jax.nn.sigmoid(gate(3))
        c_t = f_t * c + i_t * g_t
        h_t = o_t * jnp.tanh(c_t)
        return (h_t, c_t), h_t

    (h_last, c_last), hs = jax.lax.scan(step, (h, c), jnp.transpose(x, (1, 0, 2)))
    return jnp.transpose(hs, (1, 0, 2)), (h_last, c_last)


def init_params(key, input_size, hidden_size):
    """Deterministic init mimicking nn.Linear default (uniform +-1/sqrt(fan_in))."""
    keys = jax.random.split(key, 16)
    kx = 1.0 / jnp.sqrt(jnp.float32(input_size))
    kh = 1.0 / jnp.sqrt(jnp.float32(hidden_size))
    # gate order: i, f, g, o
    wx = jnp.stack([jax.random.uniform(keys[g], (input_size, hidden_size),
                                       jnp.float32, -kx, kx) for g in range(4)])
    wh = jnp.stack([jax.random.uniform(keys[4 + g], (hidden_size, hidden_size),
                                       jnp.float32, -kh, kh) for g in range(4)])
    bx = jnp.stack([jax.random.uniform(keys[8 + g], (hidden_size,),
                                       jnp.float32, -kx, kx) for g in range(4)])
    bh = jnp.stack([jax.random.uniform(keys[12 + g], (hidden_size,),
                                       jnp.float32, -kh, kh) for g in range(4)])
    b = bx + bh   # combined bias (Linear_x bias + Linear_h bias)
    return wx, wh, b


# TODO(synk): optional user-supplied (h_0, c_0) initial state (the PyTorch
# `*args` path) is not plumbed into the kernel; only the default zero state is.

if __name__ == "__main__":
    batch, seq, input_size, hidden_size = 2, 8, 32, 32

    key = jax.random.PRNGKey(0)
    k_x, k_p = jax.random.split(key)
    x = jax.random.normal(k_x, (batch, seq, input_size), jnp.float32)
    wx, wh, b = init_params(k_p, input_size, hidden_size)

    hs_ref, (h_ref, c_ref) = _ref_lstm(x, wx, wh, b)

    # 1) f32-matmul path, chunked time: tight check against the reference.
    f32_fn = jax.jit(functools.partial(lstm_layer_pallas,
                                       matmul_dtype=jnp.float32))
    hs, (h_last, c_last) = f32_fn(x, wx, wh, b)
    jax.block_until_ready((hs, h_last, c_last))
    assert jnp.allclose(hs, hs_ref, atol=1e-5, rtol=1e-5)
    assert jnp.allclose(h_last, h_ref, atol=1e-5, rtol=1e-5)
    assert jnp.allclose(c_last, c_ref, atol=1e-5, rtol=1e-5)

    # 2) f32 path with a chunk size that does NOT divide seq (exercises the
    #    padded-timestep masking).
    f32_fn_c3 = jax.jit(functools.partial(lstm_layer_pallas,
                                          matmul_dtype=jnp.float32, t_chunk=3))
    hs3, (h3, c3) = f32_fn_c3(x, wx, wh, b)
    jax.block_until_ready((hs3, h3, c3))
    assert jnp.allclose(hs3, hs_ref, atol=1e-5, rtol=1e-5)
    assert jnp.allclose(h3, h_ref, atol=1e-5, rtol=1e-5)
    assert jnp.allclose(c3, c_ref, atol=1e-5, rtol=1e-5)

    # 3) Default bf16-matmul path (f32 accumulation and f32 carried state):
    #    looser tolerance per recurrent bf16 rounding accumulation.
    bf16_fn = jax.jit(lstm_layer_pallas)
    hs16, (h16, c16) = bf16_fn(x, wx, wh, b)
    jax.block_until_ready((hs16, h16, c16))
    assert jnp.allclose(hs16, hs_ref, atol=5e-2, rtol=5e-2)
    assert jnp.allclose(h16, h_ref, atol=5e-2, rtol=5e-2)
    assert jnp.allclose(c16, c_ref, atol=5e-2, rtol=5e-2)

    print("KERNEL_OK")
</pallas_src>

<mosaic_0001>
module attributes {stable_mosaic.version = 11 : i64} {
  func.func @_lstm_kernel(%arg0: i32, %arg1: i32, %arg2: memref<8x2x128xf32, #tpu.memory_space<vmem>>, %arg3: memref<32x128xf32, #tpu.memory_space<any>>, %arg4: memref<8x2x32xf32, #tpu.memory_space<vmem>>, %arg5: memref<2x32xf32, #tpu.memory_space<vmem>>, %arg6: memref<2x32xf32, #tpu.memory_space<vmem>>, %arg7: memref<32x128xf32, #tpu.memory_space<vmem>>, %arg8: memref<1x!tpu.dma_semaphore, #tpu.memory_space<semaphore_mem>>, %arg9: memref<2x32xf32, #tpu.memory_space<vmem>>, %arg10: memref<2x32xf32, #tpu.memory_space<vmem>>) attributes {dimension_semantics = [#tpu.dimension_semantics<parallel>, #tpu.dimension_semantics<arbitrary>], iteration_bounds = array<i64: 1, 1>, scalar_prefetch = 0 : i64, scratch_operands = 4 : i64, tpu.core_type = #tpu.core_type<tc>, window_params = [{transform_indices = @transform_0, window_bounds = array<i64: 8, 2, 128>}, {}, {transform_indices = @transform_2, window_bounds = array<i64: 8, 2, 32>}, {transform_indices = @transform_3, window_bounds = array<i64: 2, 32>}, {transform_indices = @transform_4, window_bounds = array<i64: 2, 32>}]} {
    %c0_i32 = arith.constant 0 : i32
    %0 = arith.cmpi eq, %arg1, %c0_i32 : i32
    %1 = arith.extui %0 : i1 to i32
    %c0_i32_0 = arith.constant 0 : i32
    %2 = arith.cmpi ne, %1, %c0_i32_0 : i32
    scf.if %2 {
      %c0_i32_92 = arith.constant 0 : i32
      %323 = tpu.memref_slice %arg8[%c0_i32_92] : memref<1x!tpu.dma_semaphore, #tpu.memory_space<semaphore_mem>> -> memref<1x!tpu.dma_semaphore, #tpu.memory_space<semaphore_mem>>
      %324 = tpu.memref_squeeze %323 : memref<1x!tpu.dma_semaphore, #tpu.memory_space<semaphore_mem>> -> memref<!tpu.dma_semaphore, #tpu.memory_space<semaphore_mem>>
      tpu.enqueue_dma source(%arg3 : memref<32x128xf32, #tpu.memory_space<any>>) target(%arg7 : memref<32x128xf32, #tpu.memory_space<vmem>>) target_semaphore(%324 : memref<!tpu.dma_semaphore, #tpu.memory_space<semaphore_mem>>)
      %c0_i32_93 = arith.constant 0 : i32
      %325 = tpu.memref_slice %arg8[%c0_i32_93] : memref<1x!tpu.dma_semaphore, #tpu.memory_space<semaphore_mem>> -> memref<1x!tpu.dma_semaphore, #tpu.memory_space<semaphore_mem>>
      %326 = tpu.memref_squeeze %325 : memref<1x!tpu.dma_semaphore, #tpu.memory_space<semaphore_mem>> -> memref<!tpu.dma_semaphore, #tpu.memory_space<semaphore_mem>>
      tpu.wait_dma2 semaphore(%326 : memref<!tpu.dma_semaphore, #tpu.memory_space<semaphore_mem>>) src(%arg3 : memref<32x128xf32, #tpu.memory_space<any>>) dst(%arg7 : memref<32x128xf32, #tpu.memory_space<vmem>>)
      %cst_94 = arith.constant 0.000000e+00 : f32
      %327 = vector.broadcast %cst_94 : f32 to vector<2x32xf32>
      %c0_95 = arith.constant 0 : index
      %c0_96 = arith.constant 0 : index
      %328 = vector.load %arg9[%c0_95, %c0_96] : memref<2x32xf32, #tpu.memory_space<vmem>>, vector<2x32xf32>
      tpu.vector_store %arg9[%c0_95, %c0_96], %327 {strides = array<i32>} : memref<2x32xf32, #tpu.memory_space<vmem>>, vector<2x32xf32>,
      %cst_97 = arith.constant 0.000000e+00 : f32
      %329 = vector.broadcast %cst_97 : f32 to vector<2x32xf32>
      %c0_98 = arith.constant 0 : index
      %c0_99 = arith.constant 0 : index
      %330 = vector.load %arg10[%c0_98, %c0_99] : memref<2x32xf32, #tpu.memory_space<vmem>>, vector<2x32xf32>
      tpu.vector_store %arg10[%c0_98, %c0_99], %329 {strides = array<i32>} : memref<2x32xf32, #tpu.memory_space<vmem>>, vector<2x32xf32>,
    } else {
    }
    %c0 = arith.constant 0 : index
    %c0_1 = arith.constant 0 : index
    %3 = vector.load %arg7[%c0, %c0_1] : memref<32x128xf32, #tpu.memory_space<vmem>>, vector<32x128xf32>
    %c0_2 = arith.constant 0 : index
    %c0_3 = arith.constant 0 : index
    %4 = vector.load %arg9[%c0_2, %c0_3] : memref<2x32xf32, #tpu.memory_space<vmem>>, vector<2x32xf32>
    %c0_4 = arith.constant 0 : index
    %c0_5 = arith.constant 0 : index
    %5 = vector.load %arg10[%c0_4, %c0_5] : memref<2x32xf32, #tpu.memory_space<vmem>>, vector<2x32xf32>
    %c0_i32_6 = arith.constant 0 : i32
    %cst = arith.constant dense<0.000000e+00> : vector<2x128xf32>
    %6 = tpu.matmul %4, %3, %cst {dimension_numbers = #tpu.dot_dimension_numbers<[1], [0], [0], [1], [0, 0, 1, 1], [], []>} : vector<2x32xf32>, vector<32x128xf32>, vector<2x128xf32> -> vector<2x128xf32>
    %7 = arith.index_cast %c0_i32_6 : i32 to index
    %c0_7 = arith.constant 0 : index
    %c0_8 = arith.constant 0 : index
    %8 = vector.load %arg2[%7, %c0_7, %c0_8] : memref<8x2x128xf32, #tpu.memory_space<vmem>>, vector<1x2x128xf32>
    %9 = vector.shape_cast %8 : vector<1x2x128xf32> to vector<2x128xf32>
    %10 = arith.addf %6, %9 : vector<2x128xf32>
    %11 = vector.extract_strided_slice %10 {offsets = [0, 0], sizes = [2, 32], strides = [1, 1]} : vector<2x128xf32> to vector<2x32xf32>
    %12 = arith.negf %11 : vector<2x32xf32>
    %13 = math.exp %12 : vector<2x32xf32>
    %cst_9 = arith.constant 1.000000e+00 : f32
    %14 = vector.broadcast %cst_9 : f32 to vector<2x32xf32>
    %15 = arith.addf %14, %13 : vector<2x32xf32>
    %16 = arith.divf %14, %15 : vector<2x32xf32>
    %17 = vector.extract_strided_slice %10 {offsets = [0, 32], sizes = [2, 32], strides = [1, 1]} : vector<2x128xf32> to vector<2x32xf32>
    %18 = arith.negf %17 : vector<2x32xf32>
    %19 = math.exp %18 : vector<2x32xf32>
    %cst_10 = arith.constant 1.000000e+00 : f32
    %20 = vector.broadcast %cst_10 : f32 to vector<2x32xf32>
    %21 = arith.addf %20, %19 : vector<2x32xf32>
    %22 = arith.divf %20, %21 : vector<2x32xf32>
    %23 = vector.extract_strided_slice %10 {offsets = [0, 64], sizes = [2, 32], strides = [1, 1]} : vector<2x128xf32> to vector<2x32xf32>
    %24 = math.tanh %23 : vector<2x32xf32>
    %25 = vector.extract_strided_slice %10 {offsets = [0, 96], sizes = [2, 32], strides = [1, 1]} : vector<2x128xf32> to vector<2x32xf32>
    %26 = arith.negf %25 : vector<2x32xf32>
    %27 = math.exp %26 : vector<2x32xf32>
    %cst_11 = arith.constant 1.000000e+00 : f32
    %28 = vector.broadcast %cst_11 : f32 to vector<2x32xf32>
    %29 = arith.addf %28, %27 : vector<2x32xf32>
    %30 = arith.divf %28, %29 : vector<2x32xf32>
    %31 = arith.mulf %22, %5 : vector<2x32xf32>
    %32 = arith.mulf %16, %24 : vector<2x32xf32>
    %33 = arith.addf %31, %32 : vector<2x32xf32>
    %34 = math.tanh %33 : vector<2x32xf32>
    %35 = arith.mulf %30, %34 : vector<2x32xf32>
    %c8_i32 = arith.constant 8 : i32
    %36 = arith.muli %arg1, %c8_i32 : i32
    %37 = arith.addi %36, %c0_i32_6 : i32
    %c8_i32_12 = arith.constant 8 : i32
    %38 = arith.cmpi slt, %37, %c8_i32_12 : i32
    %39 = arith.select %38, %35, %4 : vector<2x32xf32>
    %40 = arith.select %38, %33, %5 : vector<2x32xf32>
    %41 = arith.index_cast %c0_i32_6 : i32 to index
    %c0_13 = arith.constant 0 : index
    %c0_14 = arith.constant 0 : index
    %42 = vector.load %arg4[%41, %c0_13, %c0_14] : memref<8x2x32xf32, #tpu.memory_space<vmem>>, vector<1x2x32xf32>
    %43 = vector.shape_cast %42 : vector<1x2x32xf32> to vector<2x32xf32>
    %44 = vector.shape_cast %39 : vector<2x32xf32> to vector<1x2x32xf32>
    tpu.vector_store %arg4[%41, %c0_13, %c0_14], %44 {strides = array<i32>} : memref<8x2x32xf32, #tpu.memory_space<vmem>>, vector<1x2x32xf32>,
    %c1_i32 = arith.constant 1 : i32
    %cst_15 = arith.constant dense<0.000000e+00> : vector<2x128xf32>
    %45 = tpu.matmul %39, %3, %cst_15 {dimension_numbers = #tpu.dot_dimension_numbers<[1], [0], [0], [1], [0, 0, 1, 1], [], []>} : vector<2x32xf32>, vector<32x128xf32>, vector<2x128xf32> -> vector<2x128xf32>
    %46 = arith.index_cast %c1_i32 : i32 to index
    %c0_16 = arith.constant 0 : index
    %c0_17 = arith.constant 0 : index
    %47 = vector.load %arg2[%46, %c0_16, %c0_17] : memref<8x2x128xf32, #tpu.memory_space<vmem>>, vector<1x2x128xf32>
    %48 = vector.shape_cast %47 : vector<1x2x128xf32> to vector<2x128xf32>
    %49 = arith.addf %45, %48 : vector<2x128xf32>
    %50 = vector.extract_strided_slice %49 {offsets = [0, 0], sizes = [2, 32], strides = [1, 1]} : vector<2x128xf32> to vector<2x32xf32>
    %51 = arith.negf %50 : vector<2x32xf32>
    %52 = math.exp %51 : vector<2x32xf32>
    %cst_18 = arith.constant 1.000000e+00 : f32
    %53 = vector.broadcast %cst_18 : f32 to vector<2x32xf32>
    %54 = arith.addf %53, %52 : vector<2x32xf32>
    %55 = arith.divf %53, %54 : vector<2x32xf32>
    %56 = vector.extract_strided_slice %49 {offsets = [0, 32], sizes = [2, 32], strides = [1, 1]} : vector<2x128xf32> to vector<2x32xf32>
    %57 = arith.negf %56 : vector<2x32xf32>
    %58 = math.exp %57 : vector<2x32xf32>
    %cst_19 = arith.constant 1.000000e+00 : f32
    %59 = vector.broadcast %cst_19 : f32 to vector<2x32xf32>
    %60 = arith.addf %59, %58 : vector<2x32xf32>
    %61 = arith.divf %59, %60 : vector<2x32xf32>
    %62 = vector.extract_strided_slice %49 {offsets = [0, 64], sizes = [2, 32], strides = [1, 1]} : vector<2x128xf32> to vector<2x32xf32>
    %63 = math.tanh %62 : vector<2x32xf32>
    %64 = vector.extract_strided_slice %49 {offsets = [0, 96], sizes = [2, 32], strides = [1, 1]} : vector<2x128xf32> to vector<2x32xf32>
    %65 = arith.negf %64 : vector<2x32xf32>
    %66 = math.exp %65 : vector<2x32xf32>
    %cst_20 = arith.constant 1.000000e+00 : f32
    %67 = vector.broadcast %cst_20 : f32 to vector<2x32xf32>
    %68 = arith.addf %67, %66 : vector<2x32xf32>
    %69 = arith.divf %67, %68 : vector<2x32xf32>
    %70 = arith.mulf %61, %40 : vector<2x32xf32>
    %71 = arith.mulf %55, %63 : vector<2x32xf32>
    %72 = arith.addf %70, %71 : vector<2x32xf32>
    %73 = math.tanh %72 : vector<2x32xf32>
    %74 = arith.mulf %69, %73 : vector<2x32xf32>
    %c8_i32_21 = arith.constant 8 : i32
    %75 = arith.muli %arg1, %c8_i32_21 : i32
    %76 = arith.addi %75, %c1_i32 : i32
    %c8_i32_22 = arith.constant 8 : i32
    %77 = arith.cmpi slt, %76, %c8_i32_22 : i32
    %78 = arith.select %77, %74, %39 : vector<2x32xf32>
    %79 = arith.select %77, %72, %40 : vector<2x32xf32>
    %80 = arith.index_cast %c1_i32 : i32 to index
    %c0_23 = arith.constant 0 : index
    %c0_24 = arith.constant 0 : index
    %81 = vector.load %arg4[%80, %c0_23, %c0_24] : memref<8x2x32xf32, #tpu.memory_space<vmem>>, vector<1x2x32xf32>
    %82 = vector.shape_cast %81 : vector<1x2x32xf32> to vector<2x32xf32>
    %83 = vector.shape_cast %78 : vector<2x32xf32> to vector<1x2x32xf32>
    tpu.vector_store %arg4[%80, %c0_23, %c0_24], %83 {strides = array<i32>} : memref<8x2x32xf32, #tpu.memory_space<vmem>>, vector<1x2x32xf32>,
    %c2_i32 = arith.constant 2 : i32
    %cst_25 = arith.constant dense<0.000000e+00> : vector<2x128xf32>
    %84 = tpu.matmul %78, %3, %cst_25 {dimension_numbers = #tpu.dot_dimension_numbers<[1], [0], [0], [1], [0, 0, 1, 1], [], []>} : vector<2x32xf32>, vector<32x128xf32>, vector<2x128xf32> -> vector<2x128xf32>
    %85 = arith.index_cast %c2_i32 : i32 to index
    %c0_26 = arith.constant 0 : index
    %c0_27 = arith.constant 0 : index
    %86 = vector.load %arg2[%85, %c0_26, %c0_27] : memref<8x2x128xf32, #tpu.memory_space<vmem>>, vector<1x2x128xf32>
    %87 = vector.shape_cast %86 : vector<1x2x128xf32> to vector<2x128xf32>
    %88 = arith.addf %84, %87 : vector<2x128xf32>
    %89 = vector.extract_strided_slice %88 {offsets = [0, 0], sizes = [2, 32], strides = [1, 1]} : vector<2x128xf32> to vector<2x32xf32>
    %90 = arith.negf %89 : vector<2x32xf32>
    %91 = math.exp %90 : vector<2x32xf32>
    %cst_28 = arith.constant 1.000000e+00 : f32
    %92 = vector.broadcast %cst_28 : f32 to vector<2x32xf32>
    %93 = arith.addf %92, %91 : vector<2x32xf32>
    %94 = arith.divf %92, %93 : vector<2x32xf32>
    %95 = vector.extract_strided_slice %88 {offsets = [0, 32], sizes = [2, 32], strides = [1, 1]} : vector<2x128xf32> to vector<2x32xf32>
    %96 = arith.negf %95 : vector<2x32xf32>
    %97 = math.exp %96 : vector<2x32xf32>
    %cst_29 = arith.constant 1.000000e+00 : f32
    %98 = vector.broadcast %cst_29 : f32 to vector<2x32xf32>
    %99 = arith.addf %98, %97 : vector<2x32xf32>
    %100 = arith.divf %98, %99 : vector<2x32xf32>
    %101 = vector.extract_strided_slice %88 {offsets = [0, 64], sizes = [2, 32], strides = [1, 1]} : vector<2x128xf32> to vector<2x32xf32>
    %102 = math.tanh %101 : vector<2x32xf32>
    %103 = vector.extract_strided_slice %88 {offsets = [0, 96], sizes = [2, 32], strides = [1, 1]} : vector<2x128xf32> to vector<2x32xf32>
    %104 = arith.negf %103 : vector<2x32xf32>
    %105 = math.exp %104 : vector<2x32xf32>
    %cst_30 = arith.constant 1.000000e+00 : f32
    %106 = vector.broadcast %cst_30 : f32 to vector<2x32xf32>
    %107 = arith.addf %106, %105 : vector<2x32xf32>
    %108 = arith.divf %106, %107 : vector<2x32xf32>
    %109 = arith.mulf %100, %79 : vector<2x32xf32>
    %110 = arith.mulf %94, %102 : vector<2x32xf32>
    %111 = arith.addf %109, %110 : vector<2x32xf32>
    %112 = math.tanh %111 : vector<2x32xf32>
    %113 = arith.mulf %108, %112 : vector<2x32xf32>
    %c8_i32_31 = arith.constant 8 : i32
    %114 = arith.muli %arg1, %c8_i32_31 : i32
    %115 = arith.addi %114, %c2_i32 : i32
    %c8_i32_32 = arith.constant 8 : i32
    %116 = arith.cmpi slt, %115, %c8_i32_32 : i32
    %117 = arith.select %116, %113, %78 : vector<2x32xf32>
    %118 = arith.select %116, %111, %79 : vector<2x32xf32>
    %119 = arith.index_cast %c2_i32 : i32 to index
    %c0_33 = arith.constant 0 : index
    %c0_34 = arith.constant 0 : index
    %120 = vector.load %arg4[%119, %c0_33, %c0_34] : memref<8x2x32xf32, #tpu.memory_space<vmem>>, vector<1x2x32xf32>
    %121 = vector.shape_cast %120 : vector<1x2x32xf32> to vector<2x32xf32>
    %122 = vector.shape_cast %117 : vector<2x32xf32> to vector<1x2x32xf32>
    tpu.vector_store %arg4[%119, %c0_33, %c0_34], %122 {strides = array<i32>} : memref<8x2x32xf32, #tpu.memory_space<vmem>>, vector<1x2x32xf32>,
    %c3_i32 = arith.constant 3 : i32
    %cst_35 = arith.constant dense<0.000000e+00> : vector<2x128xf32>
    %123 = tpu.matmul %117, %3, %cst_35 {dimension_numbers = #tpu.dot_dimension_numbers<[1], [0], [0], [1], [0, 0, 1, 1], [], []>} : vector<2x32xf32>, vector<32x128xf32>, vector<2x128xf32> -> vector<2x128xf32>
    %124 = arith.index_cast %c3_i32 : i32 to index
    %c0_36 = arith.constant 0 : index
    %c0_37 = arith.constant 0 : index
    %125 = vector.load %arg2[%124, %c0_36, %c0_37] : memref<8x2x128xf32, #tpu.memory_space<vmem>>, vector<1x2x128xf32>
    %126 = vector.shape_cast %125 : vector<1x2x128xf32> to vector<2x128xf32>
    %127 = arith.addf %123, %126 : vector<2x128xf32>
    %128 = vector.extract_strided_slice %127 {offsets = [0, 0], sizes = [2, 32], strides = [1, 1]} : vector<2x128xf32> to vector<2x32xf32>
    %129 = arith.negf %128 : vector<2x32xf32>
    %130 = math.exp %129 : vector<2x32xf32>
    %cst_38 = arith.constant 1.000000e+00 : f32
    %131 = vector.broadcast %cst_38 : f32 to vector<2x32xf32>
    %132 = arith.addf %131, %130 : vector<2x32xf32>
    %133 = arith.divf %131, %132 : vector<2x32xf32>
    %134 = vector.extract_strided_slice %127 {offsets = [0, 32], sizes = [2, 32], strides = [1, 1]} : vector<2x128xf32> to vector<2x32xf32>
    %135 = arith.negf %134 : vector<2x32xf32>
    %136 = math.exp %135 : vector<2x32xf32>
    %cst_39 = arith.constant 1.000000e+00 : f32
    %137 = vector.broadcast %cst_39 : f32 to vector<2x32xf32>
    %138 = arith.addf %137, %136 : vector<2x32xf32>
    %139 = arith.divf %137, %138 : vector<2x32xf32>
    %140 = vector.extract_strided_slice %127 {offsets = [0, 64], sizes = [2, 32], strides = [1, 1]} : vector<2x128xf32> to vector<2x32xf32>
    %141 = math.tanh %140 : vector<2x32xf32>
    %142 = vector.extract_strided_slice %127 {offsets = [0, 96], sizes = [2, 32], strides = [1, 1]} : vector<2x128xf32> to vector<2x32xf32>
    %143 = arith.negf %142 : vector<2x32xf32>
    %144 = math.exp %143 : vector<2x32xf32>
    %cst_40 = arith.constant 1.000000e+00 : f32
    %145 = vector.broadcast %cst_40 : f32 to vector<2x32xf32>
    %146 = arith.addf %145, %144 : vector<2x32xf32>
    %147 = arith.divf %145, %146 : vector<2x32xf32>
    %148 = arith.mulf %139, %118 : vector<2x32xf32>
    %149 = arith.mulf %133, %141 : vector<2x32xf32>
    %150 = arith.addf %148, %149 : vector<2x32xf32>
    %151 = math.tanh %150 : vector<2x32xf32>
    %152 = arith.mulf %147, %151 : vector<2x32xf32>
    %c8_i32_41 = arith.constant 8 : i32
    %153 = arith.muli %arg1, %c8_i32_41 : i32
    %154 = arith.addi %153, %c3_i32 : i32
    %c8_i32_42 = arith.constant 8 : i32
    %155 = arith.cmpi slt, %154, %c8_i32_42 : i32
    %156 = arith.select %155, %152, %117 : vector<2x32xf32>
    %157 = arith.select %155, %150, %118 : vector<2x32xf32>
    %158 = arith.index_cast %c3_i32 : i32 to index
    %c0_43 = arith.constant 0 : index
    %c0_44 = arith.constant 0 : index
    %159 = vector.load %arg4[%158, %c0_43, %c0_44] : memref<8x2x32xf32, #tpu.memory_space<vmem>>, vector<1x2x32xf32>
    %160 = vector.shape_cast %159 : vector<1x2x32xf32> to vector<2x32xf32>
    %161 = vector.shape_cast %156 : vector<2x32xf32> to vector<1x2x32xf32>
    tpu.vector_store %arg4[%158, %c0_43, %c0_44], %161 {strides = array<i32>} : memref<8x2x32xf32, #tpu.memory_space<vmem>>, vector<1x2x32xf32>,
    %c4_i32 = arith.constant 4 : i32
    %cst_45 = arith.constant dense<0.000000e+00> : vector<2x128xf32>
    %162 = tpu.matmul %156, %3, %cst_45 {dimension_numbers = #tpu.dot_dimension_numbers<[1], [0], [0], [1], [0, 0, 1, 1], [], []>} : vector<2x32xf32>, vector<32x128xf32>, vector<2x128xf32> -> vector<2x128xf32>
    %163 = arith.index_cast %c4_i32 : i32 to index
    %c0_46 = arith.constant 0 : index
    %c0_47 = arith.constant 0 : index
    %164 = vector.load %arg2[%163, %c0_46, %c0_47] : memref<8x2x128xf32, #tpu.memory_space<vmem>>, vector<1x2x128xf32>
    %165 = vector.shape_cast %164 : vector<1x2x128xf32> to vector<2x128xf32>
    %166 = arith.addf %162, %165 : vector<2x128xf32>
    %167 = vector.extract_strided_slice %166 {offsets = [0, 0], sizes = [2, 32], strides = [1, 1]} : vector<2x128xf32> to vector<2x32xf32>
    %168 = arith.negf %167 : vector<2x32xf32>
    %169 = math.exp %168 : vector<2x32xf32>
    %cst_48 = arith.constant 1.000000e+00 : f32
    %170 = vector.broadcast %cst_48 : f32 to vector<2x32xf32>
    %171 = arith.addf %170, %169 : vector<2x32xf32>
    %172 = arith.divf %170, %171 : vector<2x32xf32>
    %173 = vector.extract_strided_slice %166 {offsets = [0, 32], sizes = [2, 32], strides = [1, 1]} : vector<2x128xf32> to vector<2x32xf32>
    %174 = arith.negf %173 : vector<2x32xf32>
    %175 = math.exp %174 : vector<2x32xf32>
    %cst_49 = arith.constant 1.000000e+00 : f32
    %176 = vector.broadcast %cst_49 : f32 to vector<2x32xf32>
    %177 = arith.addf %176, %175 : vector<2x32xf32>
    %178 = arith.divf %176, %177 : vector<2x32xf32>
    %179 = vector.extract_strided_slice %166 {offsets = [0, 64], sizes = [2, 32], strides = [1, 1]} : vector<2x128xf32> to vector<2x32xf32>
    %180 = math.tanh %179 : vector<2x32xf32>
    %181 = vector.extract_strided_slice %166 {offsets = [0, 96], sizes = [2, 32], strides = [1, 1]} : vector<2x128xf32> to vector<2x32xf32>
    %182 = arith.negf %181 : vector<2x32xf32>
    %183 = math.exp %182 : vector<2x32xf32>
    %cst_50 = arith.constant 1.000000e+00 : f32
    %184 = vector.broadcast %cst_50 : f32 to vector<2x32xf32>
    %185 = arith.addf %184, %183 : vector<2x32xf32>
    %186 = arith.divf %184, %185 : vector<2x32xf32>
    %187 = arith.mulf %178, %157 : vector<2x32xf32>
    %188 = arith.mulf %172, %180 : vector<2x32xf32>
    %189 = arith.addf %187, %188 : vector<2x32xf32>
    %190 = math.tanh %189 : vector<2x32xf32>
    %191 = arith.mulf %186, %190 : vector<2x32xf32>
    %c8_i32_51 = arith.constant 8 : i32
    %192 = arith.muli %arg1, %c8_i32_51 : i32
    %193 = arith.addi %192, %c4_i32 : i32
    %c8_i32_52 = arith.constant 8 : i32
    %194 = arith.cmpi slt, %193, %c8_i32_52 : i32
    %195 = arith.select %194, %191, %156 : vector<2x32xf32>
    %196 = arith.select %194, %189, %157 : vector<2x32xf32>
    %197 = arith.index_cast %c4_i32 : i32 to index
    %c0_53 = arith.constant 0 : index
    %c0_54 = arith.constant 0 : index
    %198 = vector.load %arg4[%197, %c0_53, %c0_54] : memref<8x2x32xf32, #tpu.memory_space<vmem>>, vector<1x2x32xf32>
    %199 = vector.shape_cast %198 : vector<1x2x32xf32> to vector<2x32xf32>
    %200 = vector.shape_cast %195 : vector<2x32xf32> to vector<1x2x32xf32>
    tpu.vector_store %arg4[%197, %c0_53, %c0_54], %200 {strides = array<i32>} : memref<8x2x32xf32, #tpu.memory_space<vmem>>, vector<1x2x32xf32>,
    %c5_i32 = arith.constant 5 : i32
    %cst_55 = arith.constant dense<0.000000e+00> : vector<2x128xf32>
    %201 = tpu.matmul %195, %3, %cst_55 {dimension_numbers = #tpu.dot_dimension_numbers<[1], [0], [0], [1], [0, 0, 1, 1], [], []>} : vector<2x32xf32>, vector<32x128xf32>, vector<2x128xf32> -> vector<2x128xf32>
    %202 = arith.index_cast %c5_i32 : i32 to index
    %c0_56 = arith.constant 0 : index
    %c0_57 = arith.constant 0 : index
    %203 = vector.load %arg2[%202, %c0_56, %c0_57] : memref<8x2x128xf32, #tpu.memory_space<vmem>>, vector<1x2x128xf32>
    %204 = vector.shape_cast %203 : vector<1x2x128xf32> to vector<2x128xf32>
    %205 = arith.addf %201, %204 : vector<2x128xf32>
    %206 = vector.extract_strided_slice %205 {offsets = [0, 0], sizes = [2, 32], strides = [1, 1]} : vector<2x128xf32> to vector<2x32xf32>
    %207 = arith.negf %206 : vector<2x32xf32>
    %208 = math.exp %207 : vector<2x32xf32>
    %cst_58 = arith.constant 1.000000e+00 : f32
    %209 = vector.broadcast %cst_58 : f32 to vector<2x32xf32>
    %210 = arith.addf %209, %208 : vector<2x32xf32>
    %211 = arith.divf %209, %210 : vector<2x32xf32>
    %212 = vector.extract_strided_slice %205 {offsets = [0, 32], sizes = [2, 32], strides = [1, 1]} : vector<2x128xf32> to vector<2x32xf32>
    %213 = arith.negf %212 : vector<2x32xf32>
    %214 = math.exp %213 : vector<2x32xf32>
    %cst_59 = arith.constant 1.000000e+00 : f32
    %215 = vector.broadcast %cst_59 : f32 to vector<2x32xf32>
    %216 = arith.addf %215, %214 : vector<2x32xf32>
    %217 = arith.divf %215, %216 : vector<2x32xf32>
    %218 = vector.extract_strided_slice %205 {offsets = [0, 64], sizes = [2, 32], strides = [1, 1]} : vector<2x128xf32> to vector<2x32xf32>
    %219 = math.tanh %218 : vector<2x32xf32>
    %220 = vector.extract_strided_slice %205 {offsets = [0, 96], sizes = [2, 32], strides = [1, 1]} : vector<2x128xf32> to vector<2x32xf32>
    %221 = arith.negf %220 : vector<2x32xf32>
    %222 = math.exp %221 : vector<2x32xf32>
    %cst_60 = arith.constant 1.000000e+00 : f32
    %223 = vector.broadcast %cst_60 : f32 to vector<2x32xf32>
    %224 = arith.addf %223, %222 : vector<2x32xf32>
    %225 = arith.divf %223, %224 : vector<2x32xf32>
    %226 = arith.mulf %217, %196 : vector<2x32xf32>
    %227 = arith.mulf %211, %219 : vector<2x32xf32>
    %228 = arith.addf %226, %227 : vector<2x32xf32>
    %229 = math.tanh %228 : vector<2x32xf32>
    %230 = arith.mulf %225, %229 : vector<2x32xf32>
    %c8_i32_61 = arith.constant 8 : i32
    %231 = arith.muli %arg1, %c8_i32_61 : i32
    %232 = arith.addi %231, %c5_i32 : i32
    %c8_i32_62 = arith.constant 8 : i32
    %233 = arith.cmpi slt, %232, %c8_i32_62 : i32
    %234 = arith.select %233, %230, %195 : vector<2x32xf32>
    %235 = arith.select %233, %228, %196 : vector<2x32xf32>
    %236 = arith.index_cast %c5_i32 : i32 to index
    %c0_63 = arith.constant 0 : index
    %c0_64 = arith.constant 0 : index
    %237 = vector.load %arg4[%236, %c0_63, %c0_64] : memref<8x2x32xf32, #tpu.memory_space<vmem>>, vector<1x2x32xf32>
    %238 = vector.shape_cast %237 : vector<1x2x32xf32> to vector<2x32xf32>
    %239 = vector.shape_cast %234 : vector<2x32xf32> to vector<1x2x32xf32>
    tpu.vector_store %arg4[%236, %c0_63, %c0_64], %239 {strides = array<i32>} : memref<8x2x32xf32, #tpu.memory_space<vmem>>, vector<1x2x32xf32>,
    %c6_i32 = arith.constant 6 : i32
    %cst_65 = arith.constant dense<0.000000e+00> : vector<2x128xf32>
    %240 = tpu.matmul %234, %3, %cst_65 {dimension_numbers = #tpu.dot_dimension_numbers<[1], [0], [0], [1], [0, 0, 1, 1], [], []>} : vector<2x32xf32>, vector<32x128xf32>, vector<2x128xf32> -> vector<2x128xf32>
    %241 = arith.index_cast %c6_i32 : i32 to index
    %c0_66 = arith.constant 0 : index
    %c0_67 = arith.constant 0 : index
    %242 = vector.load %arg2[%241, %c0_66, %c0_67] : memref<8x2x128xf32, #tpu.memory_space<vmem>>, vector<1x2x128xf32>
    %243 = vector.shape_cast %242 : vector<1x2x128xf32> to vector<2x128xf32>
    %244 = arith.addf %240, %243 : vector<2x128xf32>
    %245 = vector.extract_strided_slice %244 {offsets = [0, 0], sizes = [2, 32], strides = [1, 1]} : vector<2x128xf32> to vector<2x32xf32>
    %246 = arith.negf %245 : vector<2x32xf32>
    %247 = math.exp %246 : vector<2x32xf32>
    %cst_68 = arith.constant 1.000000e+00 : f32
    %248 = vector.broadcast %cst_68 : f32 to vector<2x32xf32>
    %249 = arith.addf %248, %247 : vector<2x32xf32>
    %250 = arith.divf %248, %249 : vector<2x32xf32>
    %251 = vector.extract_strided_slice %244 {offsets = [0, 32], sizes = [2, 32], strides = [1, 1]} : vector<2x128xf32> to vector<2x32xf32>
    %252 = arith.negf %251 : vector<2x32xf32>
    %253 = math.exp %252 : vector<2x32xf32>
    %cst_69 = arith.constant 1.000000e+00 : f32
    %254 = vector.broadcast %cst_69 : f32 to vector<2x32xf32>
    %255 = arith.addf %254, %253 : vector<2x32xf32>
    %256 = arith.divf %254, %255 : vector<2x32xf32>
    %257 = vector.extract_strided_slice %244 {offsets = [0, 64], sizes = [2, 32], strides = [1, 1]} : vector<2x128xf32> to vector<2x32xf32>
    %258 = math.tanh %257 : vector<2x32xf32>
    %259 = vector.extract_strided_slice %244 {offsets = [0, 96], sizes = [2, 32], strides = [1, 1]} : vector<2x128xf32> to vector<2x32xf32>
    %260 = arith.negf %259 : vector<2x32xf32>
    %261 = math.exp %260 : vector<2x32xf32>
    %cst_70 = arith.constant 1.000000e+00 : f32
    %262 = vector.broadcast %cst_70 : f32 to vector<2x32xf32>
    %263 = arith.addf %262, %261 : vector<2x32xf32>
    %264 = arith.divf %262, %263 : vector<2x32xf32>
    %265 = arith.mulf %256, %235 : vector<2x32xf32>
    %266 = arith.mulf %250, %258 : vector<2x32xf32>
    %267 = arith.addf %265, %266 : vector<2x32xf32>
    %268 = math.tanh %267 : vector<2x32xf32>
    %269 = arith.mulf %264, %268 : vector<2x32xf32>
    %c8_i32_71 = arith.constant 8 : i32
    %270 = arith.muli %arg1, %c8_i32_71 : i32
    %271 = arith.addi %270, %c6_i32 : i32
    %c8_i32_72 = arith.constant 8 : i32
    %272 = arith.cmpi slt, %271, %c8_i32_72 : i32
    %273 = arith.select %272, %269, %234 : vector<2x32xf32>
    %274 = arith.select %272, %267, %235 : vector<2x32xf32>
    %275 = arith.index_cast %c6_i32 : i32 to index
    %c0_73 = arith.constant 0 : index
    %c0_74 = arith.constant 0 : index
    %276 = vector.load %arg4[%275, %c0_73, %c0_74] : memref<8x2x32xf32, #tpu.memory_space<vmem>>, vector<1x2x32xf32>
    %277 = vector.shape_cast %276 : vector<1x2x32xf32> to vector<2x32xf32>
    %278 = vector.shape_cast %273 : vector<2x32xf32> to vector<1x2x32xf32>
    tpu.vector_store %arg4[%275, %c0_73, %c0_74], %278 {strides = array<i32>} : memref<8x2x32xf32, #tpu.memory_space<vmem>>, vector<1x2x32xf32>,
    %c7_i32 = arith.constant 7 : i32
    %cst_75 = arith.constant dense<0.000000e+00> : vector<2x128xf32>
    %279 = tpu.matmul %273, %3, %cst_75 {dimension_numbers = #tpu.dot_dimension_numbers<[1], [0], [0], [1], [0, 0, 1, 1], [], []>} : vector<2x32xf32>, vector<32x128xf32>, vector<2x128xf32> -> vector<2x128xf32>
    %280 = arith.index_cast %c7_i32 : i32 to index
    %c0_76 = arith.constant 0 : index
    %c0_77 = arith.constant 0 : index
    %281 = vector.load %arg2[%280, %c0_76, %c0_77] : memref<8x2x128xf32, #tpu.memory_space<vmem>>, vector<1x2x128xf32>
    %282 = vector.shape_cast %281 : vector<1x2x128xf32> to vector<2x128xf32>
    %283 = arith.addf %279, %282 : vector<2x128xf32>
    %284 = vector.extract_strided_slice %283 {offsets = [0, 0], sizes = [2, 32], strides = [1, 1]} : vector<2x128xf32> to vector<2x32xf32>
    %285 = arith.negf %284 : vector<2x32xf32>
    %286 = math.exp %285 : vector<2x32xf32>
    %cst_78 = arith.constant 1.000000e+00 : f32
    %287 = vector.broadcast %cst_78 : f32 to vector<2x32xf32>
    %288 = arith.addf %287, %286 : vector<2x32xf32>
    %289 = arith.divf %287, %288 : vector<2x32xf32>
    %290 = vector.extract_strided_slice %283 {offsets = [0, 32], sizes = [2, 32], strides = [1, 1]} : vector<2x128xf32> to vector<2x32xf32>
    %291 = arith.negf %290 : vector<2x32xf32>
    %292 = math.exp %291 : vector<2x32xf32>
    %cst_79 = arith.constant 1.000000e+00 : f32
    %293 = vector.broadcast %cst_79 : f32 to vector<2x32xf32>
    %294 = arith.addf %293, %292 : vector<2x32xf32>
    %295 = arith.divf %293, %294 : vector<2x32xf32>
    %296 = vector.extract_strided_slice %283 {offsets = [0, 64], sizes = [2, 32], strides = [1, 1]} : vector<2x128xf32> to vector<2x32xf32>
    %297 = math.tanh %296 : vector<2x32xf32>
    %298 = vector.extract_strided_slice %283 {offsets = [0, 96], sizes = [2, 32], strides = [1, 1]} : vector<2x128xf32> to vector<2x32xf32>
    %299 = arith.negf %298 : vector<2x32xf32>
    %300 = math.exp %299 : vector<2x32xf32>
    %cst_80 = arith.constant 1.000000e+00 : f32
    %301 = vector.broadcast %cst_80 : f32 to vector<2x32xf32>
    %302 = arith.addf %301, %300 : vector<2x32xf32>
    %303 = arith.divf %301, %302 : vector<2x32xf32>
    %304 = arith.mulf %295, %274 : vector<2x32xf32>
    %305 = arith.mulf %289, %297 : vector<2x32xf32>
    %306 = arith.addf %304, %305 : vector<2x32xf32>
    %307 = math.tanh %306 : vector<2x32xf32>
    %308 = arith.mulf %303, %307 : vector<2x32xf32>
    %c8_i32_81 = arith.constant 8 : i32
    %309 = arith.muli %arg1, %c8_i32_81 : i32
    %310 = arith.addi %309, %c7_i32 : i32
    %c8_i32_82 = arith.constant 8 : i32
    %311 = arith.cmpi slt, %310, %c8_i32_82 : i32
    %312 = arith.select %311, %308, %273 : vector<2x32xf32>
    %313 = arith.select %311, %306, %274 : vector<2x32xf32>
    %314 = arith.index_cast %c7_i32 : i32 to index
    %c0_83 = arith.constant 0 : index
    %c0_84 = arith.constant 0 : index
    %315 = vector.load %arg4[%314, %c0_83, %c0_84] : memref<8x2x32xf32, #tpu.memory_space<vmem>>, vector<1x2x32xf32>
    %316 = vector.shape_cast %315 : vector<1x2x32xf32> to vector<2x32xf32>
    %317 = vector.shape_cast %312 : vector<2x32xf32> to vector<1x2x32xf32>
    tpu.vector_store %arg4[%314, %c0_83, %c0_84], %317 {strides = array<i32>} : memref<8x2x32xf32, #tpu.memory_space<vmem>>, vector<1x2x32xf32>,
    %c8_i32_85 = arith.constant 8 : i32
    %c0_86 = arith.constant 0 : index
    %c0_87 = arith.constant 0 : index
    %318 = vector.load %arg9[%c0_86, %c0_87] : memref<2x32xf32, #tpu.memory_space<vmem>>, vector<2x32xf32>
    tpu.vector_store %arg9[%c0_86, %c0_87], %312 {strides = array<i32>} : memref<2x32xf32, #tpu.memory_space<vmem>>, vector<2x32xf32>,
    %c0_88 = arith.constant 0 : index
    %c0_89 = arith.constant 0 : index
    %319 = vector.load %arg10[%c0_88, %c0_89] : memref<2x32xf32, #tpu.memory_space<vmem>>, vector<2x32xf32>
    tpu.vector_store %arg10[%c0_88, %c0_89], %313 {strides = array<i32>} : memref<2x32xf32, #tpu.memory_space<vmem>>, vector<2x32xf32>,
    %c0_i32_90 = arith.constant 0 : i32
    %320 = arith.cmpi eq, %arg1, %c0_i32_90 : i32
    %321 = arith.extui %320 : i1 to i32
    %c0_i32_91 = arith.constant 0 : i32
    %322 = arith.cmpi ne, %321, %c0_i32_91 : i32
    scf.if %322 {
      %c0_92 = arith.constant 0 : index
      %c0_93 = arith.constant 0 : index
      %323 = vector.load %arg5[%c0_92, %c0_93] : memref<2x32xf32, #tpu.memory_space<vmem>>, vector<2x32xf32>
      tpu.vector_store %arg5[%c0_92, %c0_93], %312 {strides = array<i32>} : memref<2x32xf32, #tpu.memory_space<vmem>>, vector<2x32xf32>,
      %c0_94 = arith.constant 0 : index
      %c0_95 = arith.constant 0 : index
      %324 = vector.load %arg6[%c0_94, %c0_95] : memref<2x32xf32, #tpu.memory_space<vmem>>, vector<2x32xf32>
      tpu.vector_store %arg6[%c0_94, %c0_95], %313 {strides = array<i32>} : memref<2x32xf32, #tpu.memory_space<vmem>>, vector<2x32xf32>,
    } else {
    }
    return
  }
  func.func @transform_0(%arg0: i32, %arg1: i32) -> (i32, i32, i32) {
    %c0_i32 = arith.constant 0 : i32
    %c0_i32_0 = arith.constant 0 : i32
    return %arg1, %arg0, %c0_i32 : i32, i32, i32
  }
  func.func @transform_2(%arg0: i32, %arg1: i32) -> (i32, i32, i32) {
    %c0_i32 = arith.constant 0 : i32
    %c0_i32_0 = arith.constant 0 : i32
    return %arg1, %arg0, %c0_i32 : i32, i32, i32
  }
  func.func @transform_3(%arg0: i32, %arg1: i32) -> (i32, i32) {
    %c0_i32 = arith.constant 0 : i32
    %c0_i32_0 = arith.constant 0 : i32
    return %arg0, %c0_i32 : i32, i32
  }
  func.func @transform_4(%arg0: i32, %arg1: i32) -> (i32, i32) {
    %c0_i32 = arith.constant 0 : i32
    %c0_i32_0 = arith.constant 0 : i32
    return %arg0, %c0_i32 : i32, i32
  }
}

</mosaic_0001>

<bundles_post_ra>
// kernel: lstm_layer_pallas.1
= control target key start
LH: loop header
LB: loop body
LE: loop exit
PB: predicated region body
PF: predicated region fallthrough
CT: control target
= control target key end

     0   :  { %10 = vsyncpa [#allocation7], 0  ;;  %s1586_s0 = inlined_call_operand.vmem [shape: f32[8,2,128], index: 0, kind: input, shape index: {}]   ;;  %s1587_s1 = inlined_call_operand.vmem [shape: f32[32,128], index: 1, kind: input, shape index: {}]   ;;  %s1588_s2 = inlined_call_operand.vmem [shape: f32[8,2,32], index: 2, kind: output, shape index: {0}]   ;;  %s1589_s3 = inlined_call_operand.hbm [shape: f32[2,32], index: 3, kind: output, shape index: {1}]   ;;  %s1590_s4 = inlined_call_operand.hbm [shape: f32[2,32], index: 4, kind: output, shape index: {2}]  }
   0x1   :  { %11 = vsyncpa [#allocation9], 0  ;;  %v50_v0 = vld [vmem:[%s1587_s1] sm:$0xff]  ;;  %v52_v1 = vld [vmem:[%s1587_s1 + $0x8] sm:$0xff] }
   0x2   :  { %v54_v2 = vld [vmem:[%s1587_s1 + $0x10] sm:$0xff]  ;;  %v56_v3 = vld [vmem:[%s1587_s1 + $0x18] sm:$0xff] }
   0x3   :  { %65 = vsyncadd [#allocation3], 512 }
   0x4   :  { %1354 = dma.done.wait [#allocation3], 512 }
   0x5   :  { %1355 = vsyncadd [#allocation3], 4294966784  ;;  %v1405_v4 = vpack.c.bf16 %v52_v1, %v50_v0  ;;  %v1360_v5 = vmov 0.0|0.0   ;;  %vm69_vm0 = vcmask 254976   ;;  %v1410_v6 = vpack.c.bf16 %v56_v3, %v54_v2  ;;  %v78_v9 = vld [vmem:[%s1586_s0] sm:$0x3] }
   0x6   :  { %1190 = vmatprep.subr.bf16.mxu0 %v1360_v5  ;;  %1196 = vmatprep.subr.bf16.mxu1 %v1360_v5  ;;  %vm1361_vm1 = vmmov 0   ;;  %v1362_v7 = vmov 0.0   ;;  %vm79_vm2 = vcmask 261120   ;;  %s1363_s24 = smov 64   ;;  %s1364_s25 = smov 32  }
   0x7   :  { %1192 = vmatpush3.bf16.msra.mxu0 %v1405_v4  ;;  %1110 = vmatprep.mubr.msk.f32.mxu0 %vm1361_vm1, %v1362_v7  ;;  %70 = vst.msk [vmem:[#allocation4] sm:$0x3] %vm69_vm0, %v1362_v7  ;;  %71 = vst.msk [vmem:[#allocation5] sm:$0x3] %vm69_vm0, %v1362_v7  ;;  %v1033_v29 = vld [vmem:[%s1586_s0 + $0x2] sm:$0x3] }
   0x8   :  { %1193 = vmatprep.subr.bf16.mxu0 %v1360_v5  ;;  %1198 = vmatpush3.bf16.msra.mxu1 %v1405_v4  ;;  %v1037_v47 = vld [vmem:[%s1586_s0 + $0x4] sm:$0x3]  ;;  %v1041_v1 = vld [vmem:[%s1586_s0 + $0x6] sm:$0x3]  ;;  %s1366_s29 = smov [#allocation8]  }
   0x9   :  { %1199 = vmatprep.subr.bf16.mxu1 %v1360_v5  ;;  %1121 = vmatprep.mubr.msk.f32.mxu1 %vm1361_vm1, %v1362_v7  ;;  %s1003_s30 = sshll.u32 %s1366_s29, 4  ;;  %s1004_s30 = int_to_ptr.vmem [resolvable:$true] %s1003_s30 }
   0xa   :  { %s1310_s5 = scalar_lea.vmem %s1004_s30, 32  ;;  %p1315_p1 = scmp.lt.s32.totalorder %s1004_s30, %s1004_s30 }
   0xb   :  { %1195 = vmatpush3.bf16.msra.mxu0 %v1410_v6  ;;  %p1311_p0 = scmp.ne.s32.totalorder %s1004_s30, %s1310_s5  ;;  %p1316_p2 = scmp.lt.s32.totalorder %s1310_s5, %s1310_s5 }
   0xc   :  { %1201 = vmatpush3.bf16.msra.mxu1 %v1410_v6  ;;  %1202 = vmatprep.subr.bf16.mxu0 %v1360_v5 }
   0xd   :  { %1208 = vmatprep.subr.bf16.mxu1 %v1360_v5  ;;  %p1317_p3 = por %p1316_p2, %p1315_p1 }
   0xe   :  { %v76_v8 = vld [vmem:[#allocation4] sm:$0x3]  ;;  %v77_v14 = vld [vmem:[#allocation5] sm:$0x3] }
   0xf   :  { %1111 = vmatmul.mubr.msk.f32.vlgmr.msra.gmra.mrb[0].mxu0 %vm79_vm2, %v76_v8  ;;  %p1318_p4 = pnand %p1317_p3, %p1311_p0 }
  0x10   :  { %1204 = vmatpush3.bf16.msra.mxu0 %v1405_v4  ;;  %1132 = vmatprep.mubr.msk.f32.mxu0 %vm1361_vm1, %v1362_v7 }
  0x11   :  { %1205 = vmatprep.subr.bf16.mxu0 %v1360_v5 }
  0x14   :  { %1207 = vmatpush3.bf16.msra.mxu0 %v1410_v6 }
  0x15   :  { %1214 = vmatprep.subr.bf16.mxu0 %v1360_v5 }
  0xe2   :  { %v149_v10 = vpop.f32.mrb[0].mxu0 }
  0xe3   :  { %v150_v11 = vadd.f32 %v149_v10, %v78_v9  ;;  %v1112_v12 = vpop.f32.mrb[1].mxu0 }
  0xe5   :  { %1246 = vtanh.f32 %v150_v11  ;;  %v1032_v15 = vmul.f32 -1.442695, %v150_v11 }
  0xe7   :  { %1248 = vpow2.f32 %v1032_v15 }
  0xef   :  { %v1247_v13 = vpop.eup %1246 }
  0xf0   :  { %166 = vrot.lane.b32.xlu0 %v1247_v13, %s1363_s24 }
  0xf1   :  { %v1249_v16 = vpop.eup %1248 }
  0xf2   :  { %v156_v17 = vadd.f32 1.0, %v1249_v16 }
  0xf4   :  { %161 = vrot.lane.b32.xlu0 %v77_v14, %s1364_s25  ;;  %1250 = vrcp.f32 %v156_v17 }
  0xfe   :  { %v1251_v18 = vpop.eup %1250 }
 0x162   :  { %v167_v19 = vpop.permute.xlu0 %166 }
 0x163   :  { %v169_v20 = vmul.f32 %v1251_v18, %v167_v19 }
 0x165   :  { %171 = vrot.lane.b32.xlu1 %v169_v20, %s1364_s25 }
 0x166   :  { %v162_v21 = vpop.permute.xlu0 %161 }
 0x167   :  { %v164_v22 = vmul.f32 %v1251_v18, %v162_v21 }
 0x1d7   :  { %v172_v23 = vpop.permute.xlu1 %171 }
 0x1d8   :  { %v174_v24 = vadd.f32 %v172_v23, %v164_v22  ;;  %v1045_v23 = vld [vmem:[%s1586_s0 + $0x8] sm:$0x3] }
 0x1da   :  { %1252 = vtanh.f32 %v174_v24 }
 0x1e4   :  { %v1253_v25 = vpop.eup %1252 }
 0x1e5   :  { %177 = vrot.lane.b32.xlu1 %v1253_v25, %s1363_s24 }
 0x257   :  { %v178_v26 = vpop.permute.xlu1 %177 }
 0x258   :  { %v180_v27 = vmul.f32 %v1251_v18, %v178_v26 }
 0x25a   :  { %192 = vrot.lane.b32.xlu0 %v180_v27, %s1364_s25 }
 0x2cc   :  { %v193_v28 = vpop.permute.xlu0 %192 }
 0x2cd   :  { %196 = vst.msk [vmem:[%s1588_s2] sm:$0x3] %vm69_vm0, %v193_v28  ;;  %1122 = vmatmul.mubr.msk.f32.vlgmr.msra.gmra.mrb[0].mxu1 %vm79_vm2, %v193_v28 }
 0x2ce   :  { %1210 = vmatpush3.bf16.msra.mxu1 %v1405_v4  ;;  %1143 = vmatprep.mubr.msk.f32.mxu1 %vm1361_vm1, %v1362_v7 }
 0x2cf   :  { %1211 = vmatprep.subr.bf16.mxu1 %v1360_v5 }
 0x2d2   :  { %1213 = vmatpush3.bf16.msra.mxu1 %v1410_v6 }
 0x2d3   :  { %1220 = vmatprep.subr.bf16.mxu1 %v1360_v5 }
 0x3a0   :  { %v267_v30 = vpop.f32.mrb[0].mxu1 }
 0x3a1   :  { %v268_v31 = vadd.f32 %v1033_v29, %v267_v30  ;;  %v1123_v32 = vpop.f32.mrb[1].mxu1 }
 0x3a3   :  { %1254 = vtanh.f32 %v268_v31  ;;  %v1035_v34 = vmul.f32 -1.442695, %v268_v31 }
 0x3a5   :  { %1256 = vpow2.f32 %v1035_v34 }
 0x3ad   :  { %v1255_v33 = vpop.eup %1254 }
 0x3ae   :  { %280 = vrot.lane.b32.xlu1 %v1255_v33, %s1363_s24 }
 0x3af   :  { %v1257_v35 = vpop.eup %1256 }
 0x3b0   :  { %v274_v36 = vadd.f32 1.0, %v1257_v35 }
 0x3b2   :  { %1258 = vrcp.f32 %v274_v36 }
 0x3bc   :  { %v1259_v37 = vpop.eup %1258 }
 0x3bd   :  { %v278_v40 = vmul.f32 %v1259_v37, %v174_v24 }
 0x420   :  { %v281_v38 = vpop.permute.xlu1 %280 }
 0x421   :  { %v283_v39 = vmul.f32 %v1259_v37, %v281_v38 }
 0x423   :  { %285 = vrot.lane.b32.xlu0 %v283_v39, %s1364_s25 }
 0x495   :  { %v286_v41 = vpop.permute.xlu0 %285 }
 0x496   :  { %v288_v42 = vadd.f32 %v286_v41, %v278_v40  ;;  %v1049_v41 = vld [vmem:[%s1586_s0 + $0xa] sm:$0x3] }
 0x498   :  { %1260 = vtanh.f32 %v288_v42 }
 0x4a2   :  { %v1261_v43 = vpop.eup %1260 }
 0x4a3   :  { %291 = vrot.lane.b32.xlu1 %v1261_v43, %s1363_s24 }
 0x515   :  { %v292_v44 = vpop.permute.xlu1 %291 }
 0x516   :  { %v294_v45 = vmul.f32 %v1259_v37, %v292_v44 }
 0x518   :  { %303 = vrot.lane.b32.xlu0 %v294_v45, %s1364_s25 }
 0x58a   :  { %v304_v46 = vpop.permute.xlu0 %303 }
 0x58b   :  { %1036 = vst.msk [vmem:[%s1588_s2 + $0x2] sm:$0x3] %vm69_vm0, %v304_v46  ;;  %1133 = vmatmul.mubr.msk.f32.vlgmr.msra.gmra.mrb[2].mxu0 %vm79_vm2, %v304_v46 }
 0x58c   :  { %1216 = vmatpush3.bf16.msra.mxu0 %v1405_v4  ;;  %1154 = vmatprep.mubr.msk.f32.mxu0 %vm1361_vm1, %v1362_v7 }
 0x58d   :  { %1217 = vmatprep.subr.bf16.mxu0 %v1360_v5 }
 0x590   :  { %1219 = vmatpush3.bf16.msra.mxu0 %v1410_v6 }
 0x591   :  { %1226 = vmatprep.subr.bf16.mxu0 %v1360_v5 }
 0x65e   :  { %v378_v48 = vpop.f32.mrb[2].mxu0 }
 0x65f   :  { %v379_v49 = vadd.f32 %v1037_v47, %v378_v48  ;;  %v1134_v50 = vpop.f32.mrb[3].mxu0 }
 0x661   :  { %1262 = vtanh.f32 %v379_v49  ;;  %v1039_v52 = vmul.f32 -1.442695, %v379_v49 }
 0x663   :  { %1264 = vpow2.f32 %v1039_v52 }
 0x66b   :  { %v1263_v51 = vpop.eup %1262 }
 0x66c   :  { %391 = vrot.lane.b32.xlu1 %v1263_v51, %s1363_s24 }
 0x66d   :  { %v1265_v53 = vpop.eup %1264 }
 0x66e   :  { %v385_v54 = vadd.f32 1.0, %v1265_v53 }
 0x670   :  { %1266 = vrcp.f32 %v385_v54 }
 0x67a   :  { %v1267_v55 = vpop.eup %1266 }
 0x67b   :  { %v389_v58 = vmul.f32 %v1267_v55, %v288_v42 }
 0x6de   :  { %v392_v56 = vpop.permute.xlu1 %391 }
 0x6df   :  { %v394_v57 = vmul.f32 %v1267_v55, %v392_v56 }
 0x6e1   :  { %396 = vrot.lane.b32.xlu0 %v394_v57, %s1364_s25 }
 0x753   :  { %v397_v59 = vpop.permute.xlu0 %396 }
 0x754   :  { %v399_v60 = vadd.f32 %v397_v59, %v389_v58 }
 0x756   :  { %1268 = vtanh.f32 %v399_v60 }
 0x760   :  { %v1269_v61 = vpop.eup %1268 }
 0x761   :  { %402 = vrot.lane.b32.xlu1 %v1269_v61, %s1363_s24 }
 0x7d3   :  { %v403_v62 = vpop.permute.xlu1 %402 }
 0x7d4   :  { %v405_v63 = vmul.f32 %v1267_v55, %v403_v62  ;;  %v1053_v55 = vld [vmem:[%s1586_s0 + $0xc] sm:$0x3] }
 0x7d6   :  { %414 = vrot.lane.b32.xlu0 %v405_v63, %s1364_s25 }
 0x848   :  { %v415_v0 = vpop.permute.xlu0 %414 }
 0x849   :  { %1040 = vst.msk [vmem:[%s1588_s2 + $0x4] sm:$0x3] %vm69_vm0, %v415_v0  ;;  %1144 = vmatmul.mubr.msk.f32.vlgmr.msra.gmra.mrb[2].mxu1 %vm79_vm2, %v415_v0 }
 0x84a   :  { %1222 = vmatpush3.bf16.msra.mxu1 %v1405_v4  ;;  %1165 = vmatprep.mubr.msk.f32.mxu1 %vm1361_vm1, %v1362_v7 }
 0x84b   :  { %1223 = vmatprep.subr.bf16.mxu1 %v1360_v5 }
 0x84e   :  { %1225 = vmatpush3.bf16.msra.mxu1 %v1410_v6 }
 0x84f   :  { %1232 = vmatprep.subr.bf16.mxu1 %v1360_v5 }
 0x91c   :  { %v489_v2 = vpop.f32.mrb[2].mxu1 }
 0x91d   :  { %v490_v3 = vadd.f32 %v1041_v1, %v489_v2  ;;  %v1145_v8 = vpop.f32.mrb[3].mxu1 }
 0x91f   :  { %1270 = vtanh.f32 %v490_v3  ;;  %v1043_v10 = vmul.f32 -1.442695, %v490_v3 }
 0x921   :  { %1272 = vpow2.f32 %v1043_v10 }
 0x929   :  { %v1271_v9 = vpop.eup %1270 }
 0x92a   :  { %502 = vrot.lane.b32.xlu1 %v1271_v9, %s1363_s24 }
 0x92b   :  { %v1273_v11 = vpop.eup %1272 }
 0x92c   :  { %v496_v12 = vadd.f32 1.0, %v1273_v11 }
 0x92e   :  { %1274 = vrcp.f32 %v496_v12 }
 0x938   :  { %v1275_v13 = vpop.eup %1274 }
 0x939   :  { %v500_v16 = vmul.f32 %v1275_v13, %v399_v60 }
 0x99c   :  { %v503_v14 = vpop.permute.xlu1 %502 }
 0x99d   :  { %v505_v15 = vmul.f32 %v1275_v13, %v503_v14 }
 0x99f   :  { %507 = vrot.lane.b32.xlu0 %v505_v15, %s1364_s25 }
 0xa11   :  { %v508_v17 = vpop.permute.xlu0 %507 }
 0xa12   :  { %v510_v18 = vadd.f32 %v508_v17, %v500_v16 }
 0xa14   :  { %1276 = vtanh.f32 %v510_v18 }
 0xa1e   :  { %v1277_v19 = vpop.eup %1276 }
 0xa1f   :  { %513 = vrot.lane.b32.xlu1 %v1277_v19, %s1363_s24 }
 0xa91   :  { %v514_v20 = vpop.permute.xlu1 %513 }
 0xa92   :  { %v516_v21 = vmul.f32 %v1275_v13, %v514_v20  ;;  %v1057_v13 = vld [vmem:[%s1586_s0 + $0xe] sm:$0x3]  ;;  %s1365_s0 = smov 96  }
 0xa94   :  { %525 = vrot.lane.b32.xlu0 %v516_v21, %s1364_s25 }
 0xb06   :  { %v526_v22 = vpop.permute.xlu0 %525 }
 0xb07   :  { %1044 = vst.msk [vmem:[%s1588_s2 + $0x6] sm:$0x3] %vm69_vm0, %v526_v22  ;;  %1155 = vmatmul.mubr.msk.f32.vlgmr.msra.gmra.mrb[4].mxu0 %vm79_vm2, %v526_v22 }
 0xb08   :  { %1228 = vmatpush3.bf16.msra.mxu0 %v1405_v4  ;;  %1176 = vmatprep.mubr.msk.f32.mxu0 %vm1361_vm1, %v1362_v7 }
 0xb09   :  { %1229 = vmatprep.subr.bf16.mxu0 %v1360_v5 }
 0xb0c   :  { %1231 = vmatpush3.bf16.msra.mxu0 %v1410_v6 }
 0xbda   :  { %v600_v24 = vpop.f32.mrb[4].mxu0 }
 0xbdb   :  { %v601_v25 = vadd.f32 %v1045_v23, %v600_v24  ;;  %v1156_v26 = vpop.f32.mrb[5].mxu0 }
 0xbdd   :  { %1278 = vtanh.f32 %v601_v25  ;;  %v1047_v28 = vmul.f32 -1.442695, %v601_v25 }
 0xbdf   :  { %1280 = vpow2.f32 %v1047_v28 }
 0xbe7   :  { %v1279_v27 = vpop.eup %1278 }
 0xbe8   :  { %613 = vrot.lane.b32.xlu1 %v1279_v27, %s1363_s24 }
 0xbe9   :  { %v1281_v29 = vpop.eup %1280 }
 0xbea   :  { %v607_v30 = vadd.f32 1.0, %v1281_v29 }
 0xbec   :  { %1282 = vrcp.f32 %v607_v30 }
 0xbf6   :  { %v1283_v31 = vpop.eup %1282 }
 0xbf7   :  { %v611_v34 = vmul.f32 %v1283_v31, %v510_v18 }
 0xc5a   :  { %v614_v32 = vpop.permute.xlu1 %613 }
 0xc5b   :  { %v616_v33 = vmul.f32 %v1283_v31, %v614_v32 }
 0xc5d   :  { %618 = vrot.lane.b32.xlu0 %v616_v33, %s1364_s25 }
 0xccf   :  { %v619_v35 = vpop.permute.xlu0 %618 }
 0xcd0   :  { %v621_v36 = vadd.f32 %v619_v35, %v611_v34 }
 0xcd2   :  { %1284 = vtanh.f32 %v621_v36 }
 0xcdc   :  { %v1285_v37 = vpop.eup %1284 }
 0xcdd   :  { %624 = vrot.lane.b32.xlu1 %v1285_v37, %s1363_s24 }
 0xd4f   :  { %v625_v38 = vpop.permute.xlu1 %624 }
 0xd50   :  { %v627_v39 = vmul.f32 %v1283_v31, %v625_v38 }
 0xd52   :  { %636 = vrot.lane.b32.xlu0 %v627_v39, %s1364_s25 }
 0xdc4   :  { %v637_v40 = vpop.permute.xlu0 %636 }
 0xdc5   :  { %1048 = vst.msk [vmem:[%s1588_s2 + $0x8] sm:$0x3] %vm69_vm0, %v637_v40  ;;  %1166 = vmatmul.mubr.msk.f32.vlgmr.msra.gmra.mrb[4].mxu1 %vm79_vm2, %v637_v40 }
 0xdc6   :  { %1234 = vmatpush3.bf16.msra.mxu1 %v1405_v4  ;;  %1187 = vmatprep.mubr.msk.f32.mxu1 %vm1361_vm1, %v1362_v7 }
 0xdc7   :  { %1235 = vmatprep.subr.bf16.mxu1 %v1360_v5 }
 0xdca   :  { %1237 = vmatpush3.bf16.msra.mxu1 %v1410_v6 }
 0xe98   :  { %v711_v42 = vpop.f32.mrb[4].mxu1 }
 0xe99   :  { %v712_v43 = vadd.f32 %v1049_v41, %v711_v42  ;;  %v1167_v44 = vpop.f32.mrb[5].mxu1 }
 0xe9b   :  { %1286 = vtanh.f32 %v712_v43  ;;  %v1051_v46 = vmul.f32 -1.442695, %v712_v43 }
 0xe9d   :  { %1288 = vpow2.f32 %v1051_v46 }
 0xea5   :  { %v1287_v45 = vpop.eup %1286 }
 0xea6   :  { %724 = vrot.lane.b32.xlu1 %v1287_v45, %s1363_s24 }
 0xea7   :  { %v1289_v4 = vpop.eup %1288 }
 0xea8   :  { %v718_v47 = vadd.f32 1.0, %v1289_v4 }
 0xeaa   :  { %1290 = vrcp.f32 %v718_v47 }
 0xeb4   :  { %v1291_v7 = vpop.eup %1290 }
 0xeb5   :  { %v722_v6 = vmul.f32 %v1291_v7, %v621_v36 }
 0xf18   :  { %v725_v5 = vpop.permute.xlu1 %724 }
 0xf19   :  { %v727_v48 = vmul.f32 %v1291_v7, %v725_v5 }
 0xf1b   :  { %729 = vrot.lane.b32.xlu0 %v727_v48, %s1364_s25 }
 0xf8d   :  { %v730_v49 = vpop.permute.xlu0 %729 }
 0xf8e   :  { %v732_v50 = vadd.f32 %v730_v49, %v722_v6 }
 0xf90   :  { %1292 = vtanh.f32 %v732_v50 }
 0xf9a   :  { %v1293_v51 = vpop.eup %1292 }
 0xf9b   :  { %735 = vrot.lane.b32.xlu1 %v1293_v51, %s1363_s24 }
0x100d   :  { %v736_v52 = vpop.permute.xlu1 %735 }
0x100e   :  { %v738_v53 = vmul.f32 %v1291_v7, %v736_v52 }
0x1010   :  { %747 = vrot.lane.b32.xlu0 %v738_v53, %s1364_s25 }
0x1082   :  { %v748_v54 = vpop.permute.xlu0 %747 }
0x1083   :  { %1052 = vst.msk [vmem:[%s1588_s2 + $0xa] sm:$0x3] %vm69_vm0, %v748_v54  ;;  %1177 = vmatmul.mubr.msk.f32.vlgmr.msra.gmra.mrb[6].mxu0 %vm79_vm2, %v748_v54 }
0x1156   :  { %v822_v56 = vpop.f32.mrb[6].mxu0 }
0x1157   :  { %v823_v57 = vadd.f32 %v1053_v55, %v822_v56  ;;  %v1178_v58 = vpop.f32.mrb[7].mxu0 }
0x1159   :  { %1294 = vtanh.f32 %v823_v57  ;;  %v1055_v60 = vmul.f32 -1.442695, %v823_v57 }
0x115b   :  { %1296 = vpow2.f32 %v1055_v60 }
0x1163   :  { %v1295_v59 = vpop.eup %1294 }
0x1164   :  { %835 = vrot.lane.b32.xlu1 %v1295_v59, %s1363_s24 }
0x1165   :  { %v1297_v61 = vpop.eup %1296 }
0x1166   :  { %v829_v62 = vadd.f32 1.0, %v1297_v61 }
0x1168   :  { %1298 = vrcp.f32 %v829_v62 }
0x1172   :  { %v1299_v63 = vpop.eup %1298 }
0x1173   :  { %v833_v2 = vmul.f32 %v1299_v63, %v732_v50 }
0x11d6   :  { %v836_v0 = vpop.permute.xlu1 %835 }
0x11d7   :  { %v838_v1 = vmul.f32 %v1299_v63, %v836_v0 }
0x11d9   :  { %840 = vrot.lane.b32.xlu0 %v838_v1, %s1364_s25 }
0x124b   :  { %v841_v3 = vpop.permute.xlu0 %840 }
0x124c   :  { %v843_v8 = vadd.f32 %v841_v3, %v833_v2 }
0x124e   :  { %1300 = vtanh.f32 %v843_v8 }
0x1258   :  { %v1301_v9 = vpop.eup %1300 }
0x1259   :  { %846 = vrot.lane.b32.xlu1 %v1301_v9, %s1363_s24 }
0x12cb   :  { %v847_v10 = vpop.permute.xlu1 %846 }
0x12cc   :  { %v849_v11 = vmul.f32 %v1299_v63, %v847_v10 }
0x12ce   :  { %858 = vrot.lane.b32.xlu0 %v849_v11, %s1364_s25 }
0x1340   :  { %v859_v12 = vpop.permute.xlu0 %858 }
0x1341   :  { %1056 = vst.msk [vmem:[%s1588_s2 + $0xc] sm:$0x3] %vm69_vm0, %v859_v12  ;;  %1188 = vmatmul.mubr.msk.f32.vlgmr.msra.gmra.mrb[6].mxu1 %vm79_vm2, %v859_v12 }
0x1414   :  { %v933_v14 = vpop.f32.mrb[6].mxu1 }
0x1415   :  { %v934_v15 = vadd.f32 %v1057_v13, %v933_v14  ;;  %v1189_v16 = vpop.f32.mrb[7].mxu1 }
0x1417   :  { %1302 = vtanh.f32 %v934_v15  ;;  %v1059_v18 = vmul.f32 -1.442695, %v934_v15 }
0x1419   :  { %1304 = vpow2.f32 %v1059_v18 }
0x1421   :  { %v1303_v17 = vpop.eup %1302 }
0x1422   :  { %946 = vrot.lane.b32.xlu1 %v1303_v17, %s1363_s24 }
0x1423   :  { %v1305_v19 = vpop.eup %1304 }
0x1424   :  { %v940_v20 = vadd.f32 1.0, %v1305_v19 }
0x1426   :  { %1306 = vrcp.f32 %v940_v20 }
0x1430   :  { %v1307_v21 = vpop.eup %1306 }
0x1431   :  { %v944_v24 = vmul.f32 %v1307_v21, %v843_v8 }
0x1494   :  { %v947_v22 = vpop.permute.xlu1 %946 }
0x1495   :  { %v949_v23 = vmul.f32 %v1307_v21, %v947_v22 }
0x1497   :  { %951 = vrot.lane.b32.xlu0 %v949_v23, %s1364_s25 }
0x1509   :  { %v952_v25 = vpop.permute.xlu0 %951 }
0x150a   :  { %v954_v26 = vadd.f32 %v952_v25, %v944_v24 }
0x150c   :  { %1308 = vtanh.f32 %v954_v26 }
0x1516   :  { %v1309_v27 = vpop.eup %1308 }
0x1517   :  { %957 = vrot.lane.b32.xlu1 %v1309_v27, %s1363_s24 }
0x151b   :  { %976 = vrot.lane.b32.xlu1 %v954_v26, %s1365_s0 }
0x1589   :  { %v958_v28 = vpop.permute.xlu1 %957 }
0x158a   :  { %v960_v29 = vmul.f32 %v1307_v21, %v958_v28 }
0x158c   :  { %969 = vrot.lane.b32.xlu0 %v960_v29, %s1364_s25 }
0x158d   :  { %v977_v30 = vpop.permute.xlu1 %976 }
0x158e   :  { %979 = vst.msk [vmem:[#allocation5] sm:$0x3] %vm69_vm0, %v977_v30  ;;  %984 = vst.msk [vmem:[#allocation8] sm:$0x3] %vm69_vm0, %v977_v30 }
0x158f   :  { %1321 = shalt.err (!%p1318_p4)
}
0x1590   :  { %s1322_s7 = scalar_lea.hbm %s1590_s4, 32 }
0x1591   :  { %p1323_p5 = scmp.ne.s32.totalorder %s1590_s4, %s1322_s7  ;;  %p1326_p6 = scmp.lt.u32.totalorder %s1322_s7, %s1590_s4 }
0x1593   :  { %p1328_p7 = pnand %p1326_p6, %p1323_p5 }
0x1595   :  { %1331 = shalt.err (!%p1328_p7)
}
0x1596   :  { %1006 = dma.vmem_to_hbm [thread:$0]  %s1004_s30, 32, %s1590_s4, [#allocation9]  }
0x1597   :  { %s1367_s13 = smov [#allocation6]  }
0x1598   :  { %s993_s14 = sshll.u32 %s1367_s13, 4  ;;  %s994_s14 = int_to_ptr.vmem [resolvable:$true] %s993_s14 }
0x1599   :  { %s1332_s17 = scalar_lea.vmem %s994_s14, 32  ;;  %p1337_p9 = scmp.lt.s32.totalorder %s994_s14, %s994_s14 }
0x159a   :  { %p1333_p8 = scmp.ne.s32.totalorder %s994_s14, %s1332_s17  ;;  %p1338_p10 = scmp.lt.s32.totalorder %s1332_s17, %s1332_s17 }
0x159c   :  { %p1339_p11 = por %p1338_p10, %p1337_p9 }
0x159e   :  { %p1340_p12 = pnand %p1339_p11, %p1333_p8 }
0x15fe   :  { %v970_v31 = vpop.permute.xlu0 %969 }
0x15ff   :  { %1060 = vst.msk [vmem:[%s1588_s2 + $0xe] sm:$0x3] %vm69_vm0, %v970_v31  ;;  %974 = vst.msk [vmem:[#allocation4] sm:$0x3] %vm69_vm0, %v970_v31 }
0x1600   :  { %983 = vst.msk [vmem:[#allocation6] sm:$0x3] %vm69_vm0, %v970_v31 }
0x1601   :  { %1343 = shalt.err (!%p1340_p12)
}
0x1602   :  { %s1344_s19 = scalar_lea.hbm %s1589_s3, 32 }
0x1603   :  { %p1345_p13 = scmp.ne.s32.totalorder %s1589_s3, %s1344_s19  ;;  %p1348_p0 = scmp.lt.u32.totalorder %s1344_s19, %s1589_s3 }
0x1605   :  { %p1350_p1 = pnand %p1348_p0, %p1345_p13 }
0x1607   :  { %1353 = shalt.err (!%p1350_p1)
}
0x1608   :  { %996 = dma.vmem_to_hbm [thread:$0]  %s994_s14, 32, %s1589_s3, [#allocation7]  }
0x1609   :  { %1356 = dma.done.wait [#allocation7], 32  }
0x160a   :  { %1357 = vsyncadd [#allocation7], 4294967264 }
0x160b   :  { %1358 = dma.done.wait [#allocation9], 32  }
0x160c   :  { %1359 = vsyncadd [#allocation9], 4294967264 }
0x160d   :  { %1015 = vsyncpa [#allocation7], 1 }
0x160e   :  { %1016 = vsyncpa [#allocation9], 1 }
0x160f   :  { %1017 = vsyncmov [#allocation3] }
0x1612   :  { %s1018_s26 = vpop.sfrf %1017 }
0x1613   :  { %p1061_p2 = scmp.ne.s32.totalorder %s1018_s26, 0 }
0x1615   :  { %1022 = shalt.err (%p1061_p2)  }

</bundles_post_ra>
